<compile_context>
chip_gen: v7x
topology: tpu7x:2x2x1
jax: 0.10.0
libtpu: 0.0.40
codegen_flags: <defaults>
</compile_context>

<pallas_src>
import math

import numpy as np
import jax
import jax.numpy as jnp
from jax.experimental import pallas as pl
from jax.experimental.pallas import tpu as pltpu

LANE = 128  # TPU lane width


def _round_up(v, m):
    return (v + m - 1) // m * m


def _pad2d(a, rows, cols):
    r, c = a.shape
    if r == rows and c == cols:
        return a
    return jnp.pad(a, ((0, rows - r), (0, cols - c)))


# --------------------------------------------------------------------------
# Stage 1: support = x @ W   (computed once, hoisted out of the adj loop)
# --------------------------------------------------------------------------
def _support_kernel(x_ref, w_ref, s_ref):
    s_ref[...] = jnp.dot(
        x_ref[...], w_ref[...], preferred_element_type=jnp.float32
    ).astype(s_ref.dtype)


# --------------------------------------------------------------------------
# Stage 2: out = adj @ support + bias   (block-sparse tiled reduction)
# --------------------------------------------------------------------------
def _adj_matmul_kernel(cid_ref, nnz_ref, adj_ref, s_ref, b_ref, o_ref, acc_ref):
    i = pl.program_id(0)  # output row-block
    k = pl.program_id(1)  # position in this row-block's nonzero-column list

    @pl.when(k == 0)
    def _():
        acc_ref[...] = jnp.zeros_like(acc_ref)

    # Only accumulate real (nonzero) adjacency blocks; padded steps are skipped.
    @pl.when(k < nnz_ref[i])
    def _():
        acc_ref[...] += jnp.dot(
            adj_ref[...], s_ref[...], preferred_element_type=jnp.float32
        )

    # Bias is added exactly once, on the last reduction step, then cast+store.
    @pl.when(k == pl.num_programs(1) - 1)
    def _():
        o_ref[...] = (acc_ref[...] + b_ref[...]).astype(o_ref.dtype)


def _block_sparsity_metadata(adj_np, Np, blk):
    """Host-side: per row-block list of nonzero column-block ids (flattened)."""
    nbr = Np // blk
    n = adj_np.shape[0]
    adj_host = np.zeros((Np, Np), dtype=bool)
    adj_host[:n, :n] = adj_np != 0
    mask = adj_host.reshape(nbr, blk, nbr, blk).any(axis=(1, 3))  # [nbr, nbr]
    nnz = mask.sum(axis=1).astype(np.int32)                       # [nbr]
    max_nnz = max(int(nnz.max()), 1)
    col_ids = np.zeros((nbr, max_nnz), dtype=np.int32)
    for r in range(nbr):
        cols = np.nonzero(mask[r])[0].astype(np.int32)
        if cols.size:
            col_ids[r, : cols.size] = cols
            # Repeat last valid index for padded steps -> Pallas skips re-DMA.
            col_ids[r, cols.size:] = cols[-1]
    # Flatten to 1-D to avoid 2-D SMEM (8,128) padding blow-up.
    return jnp.asarray(col_ids.reshape(-1)), jnp.asarray(nnz), max_nnz


def gcn_layer_forward(x, adj, weight, bias=None, *, blk=128,
                      compute_dtype=jnp.bfloat16):
    """Pallas implementation of GCN_layer.forward.

    blk: adjacency tile size (multiple of 128).
    compute_dtype: matmul input dtype (bf16 halves HBM traffic; f32 accumulate).
    """
    N, D_in = x.shape
    D_out = weight.shape[1]
    out_dtype = x.dtype

    Np = _round_up(N, blk)        # pad node count to tile multiple
    Dp = _round_up(D_out, LANE)   # lane-dense output width

    x_p = _pad2d(x, Np, D_in).astype(compute_dtype)
    w_p = _pad2d(weight, D_in, Dp).astype(compute_dtype)
    adj_p = _pad2d(adj, Np, Np).astype(compute_dtype)
    if bias is None:
        b_p = jnp.zeros((1, Dp), jnp.float32)
    else:
        b_p = _pad2d(bias.reshape(1, D_out).astype(jnp.float32), 1, Dp)

    # ---- Stage 1: support = x @ W (once), row-tiled, lane-dense output ----
    support = pl.pallas_call(
        _support_kernel,
        out_shape=jax.ShapeDtypeStruct((Np, Dp), compute_dtype),
        grid_spec=pltpu.PrefetchScalarGridSpec(
            num_scalar_prefetch=0,
            grid=(Np // blk,),
            in_specs=[
                pl.BlockSpec((blk, D_in), lambda i: (i, 0)),
                pl.BlockSpec((D_in, Dp), lambda i: (0, 0)),
            ],
            out_specs=pl.BlockSpec((blk, Dp), lambda i: (i, 0)),
        ),
        compiler_params=pltpu.CompilerParams(
            dimension_semantics=("parallel",)),
    )(x_p, w_p)

    # ---- Stage 2: out = adj @ support + bias (block-sparse tiled reduction) ----
    col_ids, nnz, max_nnz = _block_sparsity_metadata(
        np.asarray(jax.device_get(adj)), Np, blk)

    def adj_map(i, k, cid, cnt, mx=max_nnz):
        return (i, cid[i * mx + k])

    def sup_map(i, k, cid, cnt, mx=max_nnz):
        return (cid[i * mx + k], 0)

    out_p = pl.pallas_call(
        _adj_matmul_kernel,
        out_shape=jax.ShapeDtypeStruct((Np, Dp), out_dtype),
        grid_spec=pltpu.PrefetchScalarGridSpec(
            num_scalar_prefetch=2,  # col_ids, nnz -> SMEM, fed to index_maps
            grid=(Np // blk, max_nnz),
            in_specs=[
                # adj tile: data-dependent column-block index (skip zero blocks)
                pl.BlockSpec((blk, blk), adj_map),
                # matching support row-block
                pl.BlockSpec((blk, Dp), sup_map),
                # bias row (resident)
                pl.BlockSpec((1, Dp), lambda i, k, cid, cnt: (0, 0)),
            ],
            out_specs=pl.BlockSpec((blk, Dp), lambda i, k, cid, cnt: (i, 0)),
            scratch_shapes=[pltpu.VMEM((blk, Dp), jnp.float32)],
        ),
        compiler_params=pltpu.CompilerParams(
            dimension_semantics=("parallel", "arbitrary")),
    )(col_ids, nnz, adj_p, support, b_p)

    return out_p[:N, :D_out]


if __name__ == "__main__":
    # Small shapes consistent with the module: N nodes, D_in -> D_out features.
    # N is deliberately not a tile multiple to exercise padding; blk=128 gives a
    # 2x2 adjacency-block grid even at this small size.
    N, D_in, D_out = 200, 48, 16
    blk = 128

    key = jax.random.PRNGKey(0)
    k_x, k_adj, k_w, k_b = jax.random.split(key, 4)

    # Deterministic parameter init matching reset_param(): uniform(-std, std),
    # std = 1/sqrt(D_out).
    std = 1.0 / math.sqrt(D_out)
    weight = jax.random.uniform(k_w, (D_in, D_out), jnp.float32, -std, std)
    bias = jax.random.uniform(k_b, (D_out,), jnp.float32, -std, std)

    # Node features and a sparse-ish, row-normalized adjacency with self-loops.
    x = jax.random.normal(k_x, (N, D_in), jnp.float32)
    adj_raw = (jax.random.uniform(k_adj, (N, N)) < 0.05).astype(jnp.float32)
    adj = adj_raw + jnp.eye(N, dtype=jnp.float32)
    adj = adj / jnp.sum(adj, axis=1, keepdims=True)

    # Plain-JAX reference (torch.spmm on sparse adj == dense matmul here).
    ref = adj @ (x @ weight) + bias

    # f32 compute path: near-exact match.
    out_f32 = jax.block_until_ready(
        gcn_layer_forward(x, adj, weight, bias, blk=blk,
                          compute_dtype=jnp.float32))
    assert out_f32.shape == (N, D_out)
    assert jnp.allclose(out_f32, ref, atol=1e-4, rtol=1e-3)

    # bf16 compute path (halves adj/support HBM traffic; f32 accumulation).
    out_bf16 = jax.block_until_ready(
        gcn_layer_forward(x, adj, weight, bias, blk=blk,
                          compute_dtype=jnp.bfloat16))
    assert out_bf16.shape == (N, D_out)
    assert jnp.allclose(out_bf16.astype(jnp.float32), ref, atol=5e-2, rtol=5e-2)

    print("KERNEL_OK")
</pallas_src>

<mosaic_0001>
module attributes {stable_mosaic.version = 11 : i64} {
  func.func @_support_kernel(%arg0: i32, %arg1: memref<128x48xf32, #tpu.memory_space<vmem>>, %arg2: memref<48x128xf32, #tpu.memory_space<vmem>>, %arg3: memref<128x128xf32, #tpu.memory_space<vmem>>) attributes {dimension_semantics = [#tpu.dimension_semantics<parallel>], iteration_bounds = array<i64: 2>, scalar_prefetch = 0 : i64, scratch_operands = 0 : i64, tpu.core_type = #tpu.core_type<tc>, window_params = [{transform_indices = @transform_0, window_bounds = array<i64: 128, 48>}, {pipeline_mode = #tpu.pipeline_mode<synchronous>, transform_indices = @transform_1, window_bounds = array<i64: 48, 128>}, {transform_indices = @transform_2, window_bounds = array<i64: 128, 128>}]} {
    %c0 = arith.constant 0 : index
    %c0_0 = arith.constant 0 : index
    %0 = vector.load %arg1[%c0, %c0_0] : memref<128x48xf32, #tpu.memory_space<vmem>>, vector<128x48xf32>
    %c0_1 = arith.constant 0 : index
    %c0_2 = arith.constant 0 : index
    %1 = vector.load %arg2[%c0_1, %c0_2] : memref<48x128xf32, #tpu.memory_space<vmem>>, vector<48x128xf32>
    %cst = arith.constant dense<0.000000e+00> : vector<128x128xf32>
    %2 = tpu.matmul %0, %1, %cst {dimension_numbers = #tpu.dot_dimension_numbers<[1], [0], [0], [1], [0, 0, 1, 1], [], []>} : vector<128x48xf32>, vector<48x128xf32>, vector<128x128xf32> -> vector<128x128xf32>
    %c0_3 = arith.constant 0 : index
    %c0_4 = arith.constant 0 : index
    %3 = vector.load %arg3[%c0_3, %c0_4] : memref<128x128xf32, #tpu.memory_space<vmem>>, vector<128x128xf32>
    tpu.vector_store %arg3[%c0_3, %c0_4], %2 {strides = array<i32>} : memref<128x128xf32, #tpu.memory_space<vmem>>, vector<128x128xf32>,
    return
  }
  func.func @transform_0(%arg0: i32) -> (i32, i32) {
    %c0_i32 = arith.constant 0 : i32
    %c0_i32_0 = arith.constant 0 : i32
    return %arg0, %c0_i32 : i32, i32
  }
  func.func @transform_1(%arg0: i32) -> (i32, i32) {
    %c0_i32 = arith.constant 0 : i32
    %c0_i32_0 = arith.constant 0 : i32
    %c0_i32_1 = arith.constant 0 : i32
    return %c0_i32, %c0_i32_0 : i32, i32
  }
  func.func @transform_2(%arg0: i32) -> (i32, i32) {
    %c0_i32 = arith.constant 0 : i32
    %c0_i32_0 = arith.constant 0 : i32
    return %arg0, %c0_i32 : i32, i32
  }
}

</mosaic_0001>

<bundles_post_ra>
// kernel: tpu_custom_call.1
= control target key start
LH: loop header
LB: loop body
LE: loop exit
PB: predicated region body
PF: predicated region fallthrough
CT: control target
= control target key end

     0   :  { %7 = vsyncpa [#allocation3], 0  ;;  %s858_s0 = inlined_call_operand.vmem [shape: f32[256,48], index: 0, kind: input, shape index: {}]   ;;  %s859_s1 = inlined_call_operand.vmem [shape: f32[48,128], index: 1, kind: input, shape index: {}]   ;;  %s860_s2 = inlined_call_operand.hbm [shape: f32[256,128], index: 2, kind: output, shape index: {}]  }
   0x1   :  { %9 = vsyncpa [#allocation3 + $0x1], 0  ;;  %s681_s9 = smov 0   ;;  %s683_s10 = smov 0  }
   0x2   :  { %s685_s11 = smov 0   ;;  %s687_s12 = smov 0  }
   0x3 LB: > { %s702_s13 = sadd.s32 4294967295, %s661_s12   ;;  %s453_s14 = sadd.s32 4294967294, %s661_s12   ;;  %s661_s12 = sphi %s687_s12, %s866_s12   ;;  %s657_s11 = sphi %s685_s11, %s865_s11   ;;  %s653_s10 = sphi %s683_s10, %s864_s10   ;;  %s649_s9 = sphi %s681_s9, %s863_s9  }
   0x4   : > { %s706_s15 = sadd.s32 1, %s661_s12   ;;  %s69_s16 = sadd.s32 1, %s657_s11 }
   0x5   : > { %s66_s17 = ssub.s32 %s661_s12, %s706_s15  ;;  %p79_p0 = scmp.ne.s32.totalorder %s657_s11, %s653_s10 }
   0x6   : > { %p67_p1 = scmp.eq.s32.totalorder %s66_s17, 0  ;;  %p80_p2 = scmp.eq.s32.totalorder %s702_s13, 1 }
   0x7   : > { %p85_p3 = scmp.ne.s32.totalorder %s653_s10, %s649_s9  ;;  %p86_p4 = scmp.eq.s32.totalorder %s453_s14, 1 }
   0x8   : > { %s717_s18 = scalar_select %p67_p1, %s657_s11, %s69_s16  }
   0x9   : > { %p719_p5 = por %p80_p2, %p79_p0  ;;  %p723_p6 = por %p86_p4, %p85_p3 }
   0xa   : > { %p456_p7 = scmp.ge.s32.totalorder %s661_s12, 1  ;;  %p116_p8 = scmp.lt.s32.totalorder %s661_s12, 3 }
   0xc   : > { %p117_p9 = pnand %p456_p7, %p116_p8 }
   0xd   : > { %v161_v0 = vld [vmem:[%s859_s1] sm:$0xff] (!%p117_p9)  ;;  %v162_v1 = vld [vmem:[%s859_s1 + $0x8] sm:$0xff] (!%p117_p9)  ;;  %v163_v2 = vld [vmem:[%s859_s1 + $0x10] sm:$0xff] (!%p117_p9)  ;;  %s458_s27 = sshll.u32 (!%p117_p9), %s702_s13, 4  ;;  %vm167_vm0 = vcmask (!%p117_p9), 392192   ;;  %s135_s16 = sand.u32 (!%p117_p9), 1, %s653_s10  }
   0xe   : > { %120 = sbr.rel (%p117_p9) target bundleno = 269 (0x10d), region = 28  ;;  %v540_v3 = vpack.c.bf16 (!%p117_p9), %v162_v1, %v161_v0  ;;  %v164_v4 = vld [vmem:[%s859_s1 + $0x18] sm:$0xff] (!%p117_p9)  ;;  %p139_p10 = scmp.lt.s32.totalorder (!%p117_p9), %s458_s27, 31  ;;  %v165_v6 = vld [vmem:[%s859_s1 + $0x20] sm:$0xff] (!%p117_p9)  ;;  %v166_v7 = vld [vmem:[%s859_s1 + $0x28] sm:$0xff] (!%p117_p9) }
   0xf   : > { %v544_v5 = vpack.c.bf16 (!%p117_p9), %v164_v4, %v163_v2  ;;  %v548_v8 = vpack.c.bf16 (!%p117_p9), %v166_v7, %v165_v6  ;;  %s457_s17 = sshll.u32 (!%p117_p9), %s135_s16, 7  ;;  %s481_s22 = sshll.u32 (!%p117_p9), %s702_s13, 11 }
  0x10   : > { %541 = vmatprep.subr.bf16.mxu0 (!%p117_p9), %v540_v3  ;;  %552 = vmatprep.subr.bf16.mxu1 (!%p117_p9), %v540_v3  ;;  %s788_s21 = scalar_lea.vmem (!%p117_p9), [#allocation2], %s457_s17  ;;  %s807_s26 = scalar_lea.hbm (!%p117_p9), %s860_s2, %s481_s22 }
  0x11   : > { %543 = vmatpush3.bf16.msra.mxu0 (!%p117_p9), %v540_v3  ;;  %555 = vmatpush3.bf16.msra.mxu1 (!%p117_p9), %v540_v3  ;;  %s391_s23 = sshll.u32 (!%p117_p9), %s788_s21, 4  ;;  %s817_s13 = scalar_lea.sflag (!%p117_p9), [#allocation3], %s135_s16  ;;  %s809_s23 = int_to_ptr.vmem [resolvable:$true] %s391_s23 }
  0x12   : > { %545 = vmatprep.subr.bf16.mxu0 (!%p117_p9), %v544_v5  ;;  %553 = vmatprep.subr.bf16.mxu1 (!%p117_p9), %v544_v5  ;;  %s663_s28 = smov (!%p117_p9), [#allocation2]  }
  0x13   : > { %s603_s29 = sshll.u32 (!%p117_p9), %s663_s28, 4  ;;  %s604_s29 = int_to_ptr.vmem [resolvable:$false] %s603_s29 }
  0x14   : > { %s605_s30 = scalar_lea.vmem (!%p117_p9), %s604_s29, 4096  ;;  %p606_p0 = scmp.lt.s32.totalorder (!%p117_p9), %s809_s23, %s604_s29 }
  0x15   : > { %s868_s27 = smov (!%p139_p10, %s458_s27), 31  ;;  %547 = vmatpush3.bf16.msra.mxu0 %v544_v5  ;;  %556 = vmatpush3.bf16.msra.mxu1 %v544_v5 }
  0x16   : > { %s459_s6 = sshll.u32 %s868_s27, 3  ;;  %549 = vmatprep.subr.bf16.mxu0 %v548_v8  ;;  %554 = vmatprep.subr.bf16.mxu1 %v548_v8  ;;  %s599_s27 = scalar_lea.vmem %s809_s23, 2048 }
  0x17   : > { %s751_s14 = scalar_lea.vmem %s858_s0, %s459_s6  ;;  %p600_p11 = scmp.ne.s32.totalorder %s809_s23, %s599_s27 }
  0x18   : > { %v145_v9 = vld [vmem:[%s751_s14] sm:$0xff]  ;;  %v146_v11 = vld [vmem:[%s751_s14 + $0x8] sm:$0xff]  ;;  %v147_v13 = vld [vmem:[%s751_s14 + $0x10] sm:$0xff]  ;;  %p607_p1 = scmp.lt.s32.totalorder %s605_s30, %s599_s27 }
  0x19   : > { %v153_v10 = vld [vmem:[%s751_s14 + $0x40] sm:$0xff]  ;;  %516 = vmatprep.mubr.msk.f32.mxu0 %vm167_vm0, %v145_v9  ;;  %551 = vmatpush3.bf16.msra.mxu0 %v548_v8  ;;  %v154_v12 = vld [vmem:[%s751_s14 + $0x48] sm:$0xff]  ;;  %v155_v14 = vld [vmem:[%s751_s14 + $0x50] sm:$0xff]  ;;  %p601_p12 = pnand %p600_p11, %p719_p5 }
  0x1a   : > { %528 = vmatprep.mubr.msk.f32.mxu1 %vm167_vm0, %v153_v10  ;;  %557 = vmatpush3.bf16.msra.mxu1 %v548_v8  ;;  %v148_v15 = vld [vmem:[%s751_s14 + $0x18] sm:$0xff]  ;;  %v149_v17 = vld [vmem:[%s751_s14 + $0x20] sm:$0xff]  ;;  %v150_v19 = vld [vmem:[%s751_s14 + $0x28] sm:$0xff]  ;;  %p608_p2 = por %p607_p1, %p606_p0 }
  0x1b   : > { %v156_v16 = vld [vmem:[%s751_s14 + $0x58] sm:$0xff]  ;;  %v157_v18 = vld [vmem:[%s751_s14 + $0x60] sm:$0xff]  ;;  %v158_v20 = vld [vmem:[%s751_s14 + $0x68] sm:$0xff]  ;;  %p602_p13 = pneg %p601_p12 }
  0x1c   : > { %517 = vmatmul.mubr.msk.f32.vlgmr.msra.gmra.mrb[0].mxu0 %vm167_vm0, %v146_v11  ;;  %v151_v21 = vld [vmem:[%s751_s14 + $0x30] sm:$0xff]  ;;  %v152_v23 = vld [vmem:[%s751_s14 + $0x38] sm:$0xff] }
  0x1d   : > { %529 = vmatmul.mubr.msk.f32.vlgmr.msra.gmra.mrb[0].mxu1 %vm167_vm0, %v154_v12  ;;  %519 = vmatprep.mubr.msk.f32.mxu0 %vm167_vm0, %v147_v13  ;;  %v159_v22 = vld [vmem:[%s751_s14 + $0x70] sm:$0xff]  ;;  %v160_v24 = vld [vmem:[%s751_s14 + $0x78] sm:$0xff]  ;;  %p609_p3 = pnand %p608_p2, %p602_p13 }
  0x1e   : > { %531 = vmatprep.mubr.msk.f32.mxu1 %vm167_vm0, %v155_v14 }
  0x20   : > { %520 = vmatmul.mubr.msk.f32.gmra.mrb[2].mxu0 %vm167_vm0, %v148_v15 }
  0x21   : > { %532 = vmatmul.mubr.msk.f32.gmra.mrb[2].mxu1 %vm167_vm0, %v156_v16  ;;  %522 = vmatprep.mubr.msk.f32.mxu0 %vm167_vm0, %v149_v17 }
  0x22   : > { %534 = vmatprep.mubr.msk.f32.mxu1 %vm167_vm0, %v157_v18 }
  0x24   : > { %523 = vmatmul.mubr.msk.f32.gmra.mrb[4].mxu0 %vm167_vm0, %v150_v19 }
  0x25   : > { %535 = vmatmul.mubr.msk.f32.gmra.mrb[4].mxu1 %vm167_vm0, %v158_v20  ;;  %525 = vmatprep.mubr.msk.f32.mxu0 %vm167_vm0, %v151_v21 }
  0x26   : > { %537 = vmatprep.mubr.msk.f32.mxu1 %vm167_vm0, %v159_v22 }
  0x28   : > { %526 = vmatmul.mubr.msk.f32.gmra.mrb[6].mxu0 %vm167_vm0, %v152_v23 }
  0x29   : > { %538 = vmatmul.mubr.msk.f32.gmra.mrb[6].mxu1 %vm167_vm0, %v160_v24 }
  0xef   : > { %v518_v25 = vpop.f32.mrb[0].mxu0 }
  0xf0   : > { %v530_v26 = vpop.f32.mrb[0].mxu1  ;;  %362 = vst [vmem:[%s788_s21 + $0x8] sm:$0xff] %v518_v25  ;;  %v282_v27 = vpop.f32.mrb[1].mxu0 }
  0xf1   : > { %370 = vst [vmem:[%s788_s21 + $0x48] sm:$0xff] %v530_v26  ;;  %v322_v28 = vpop.f32.mrb[1].mxu1  ;;  %361 = vst [vmem:[%s788_s21] sm:$0xff] %v282_v27 }
  0xf2   : > { %369 = vst [vmem:[%s788_s21 + $0x40] sm:$0xff] %v322_v28 }
  0xf3   : > { %v521_v29 = vpop.f32.mrb[2].mxu0 }
  0xf4   : > { %v533_v30 = vpop.f32.mrb[2].mxu1  ;;  %364 = vst [vmem:[%s788_s21 + $0x18] sm:$0xff] %v521_v29  ;;  %v292_v31 = vpop.f32.mrb[3].mxu0 }
  0xf5   : > { %372 = vst [vmem:[%s788_s21 + $0x58] sm:$0xff] %v533_v30  ;;  %v332_v32 = vpop.f32.mrb[3].mxu1  ;;  %363 = vst [vmem:[%s788_s21 + $0x10] sm:$0xff] %v292_v31 }
  0xf6   : > { %371 = vst [vmem:[%s788_s21 + $0x50] sm:$0xff] %v332_v32 }
  0xf7   : > { %v524_v33 = vpop.f32.mrb[4].mxu0 }
  0xf8   : > { %v536_v34 = vpop.f32.mrb[4].mxu1  ;;  %366 = vst [vmem:[%s788_s21 + $0x28] sm:$0xff] %v524_v33  ;;  %v302_v35 = vpop.f32.mrb[5].mxu0 }
  0xf9   : > { %374 = vst [vmem:[%s788_s21 + $0x68] sm:$0xff] %v536_v34  ;;  %v342_v36 = vpop.f32.mrb[5].mxu1  ;;  %365 = vst [vmem:[%s788_s21 + $0x20] sm:$0xff] %v302_v35 }
  0xfa   : > { %373 = vst [vmem:[%s788_s21 + $0x60] sm:$0xff] %v342_v36 }
  0xfb   : > { %v527_v37 = vpop.f32.mrb[6].mxu0 }
  0xfc   : > { %v539_v38 = vpop.f32.mrb[6].mxu1  ;;  %368 = vst [vmem:[%s788_s21 + $0x38] sm:$0xff] %v527_v37  ;;  %v312_v39 = vpop.f32.mrb[7].mxu0 }
  0xfd   : > { %376 = vst [vmem:[%s788_s21 + $0x78] sm:$0xff] %v539_v38  ;;  %v352_v40 = vpop.f32.mrb[7].mxu1  ;;  %367 = vst [vmem:[%s788_s21 + $0x30] sm:$0xff] %v312_v39 }
  0xfe   : > { %375 = vst [vmem:[%s788_s21 + $0x70] sm:$0xff] %v352_v40 }
  0xff   : > { %612 = shalt.err (!%p609_p3)
}
 0x100   : > { %s613_s3 = scalar_lea.hbm %s807_s26, 2048  ;;  %s617_s6 = scalar_lea.hbm %s860_s2, 4096 }
 0x101   : > { %p614_p4 = scmp.ne.s32.totalorder %s807_s26, %s613_s3  ;;  %p618_p9 = scmp.lt.u32.totalorder %s807_s26, %s860_s2 }
 0x102   : > { %p619_p10 = scmp.lt.u32.totalorder %s617_s6, %s613_s3  ;;  %p621_p12 = scmp.lt.u32.totalorder %s613_s3, %s807_s26 }
 0x103   : > { %p615_p7 = pnand %p614_p4, %p719_p5 }
 0x104   : > { %p620_p11 = por %p619_p10, %p618_p9 }
 0x105   : > { %p616_p8 = pneg %p615_p7 }
 0x106   : > { %p622_p13 = por %p621_p12, %p620_p11 }
 0x108   : > { %p623_p0 = pnand %p622_p13, %p616_p8 }
 0x10a   : > { %626 = shalt.err (!%p623_p0)
}
 0x10b   : > { %s664_s14 = smov 128   ;;  %s665_s16 = smov 8  }
 0x10c   : > { %558 = dma.vmem_to_hbm [thread:$0]  (%p719_p5), %s809_s23, 2048, %s807_s26, %s817_s13, %s664_s14, %s664_s14, %s665_s16  }
 0x10d PF: > { %p564_p1 = scmp.ge.s32.totalorder %s661_s12, 2  ;;  %s406_s17 = sand.u32 1, %s649_s9  }
 0x10e   : > { %s407_s21 = scalar_lea.sflag [#allocation3], %s406_s17 }
 0x10f   : > { %p561_p2 = pnand %p564_p1, %p723_p6 }
 0x111   : > { %644 = dma.done.wait (!%p561_p2), %s407_s21, 2048  }
 0x112   : > { %646 = vsyncadd (!%p561_p2), %s407_s21, 4294965248  ;;  %p12_p3 = scmp.ge.s32.totalorder %s706_s15, 4   ;;  %s863_s9 = smov %s653_s10 }
 0x113   : > { %s864_s10 = smov %s657_s11  ;;  %s865_s11 = smov %s717_s18 }
 0x114   : > { %s866_s12 = smov %s706_s15  ;;  %14 = sbr.rel (!%p12_p3) target bundleno = 3 (0x3), region = 63 }
 0x11b   :  { %412 = vsyncpa [#allocation3], 1 }
 0x11c   :  { %414 = vsyncpa [#allocation3 + $0x1], 1 }

</bundles_post_ra>
